<compile_context>
chip_gen: v7x
topology: tpu7x:2x2x1
jax: 0.10.0
libtpu: 0.0.40
codegen_flags: <defaults>
</compile_context>

<pallas_src>
import functools

import jax
import jax.numpy as jnp
import numpy as np
from jax.experimental import pallas as pl
from jax.experimental.pallas import tpu as pltpu

_NEG = -1e30  # bias for padded vocab columns (vanishes under exp)


# ----------------------------------------------------------------------------
# Pallas kernel: one (batch_block, time_chunk) tile of the RNN + fc + CE
# ----------------------------------------------------------------------------
def vanilla_rnn_kernel(x_ref,       # (TC, BB, Ep) f32   embedded inputs (padded)
                       y_ref,       # (TC, BB, 1)  i32   targets (padded)
                       w_ih_ref,    # (Ep, Hp)     f32   W_ih^T (padded)
                       w_hh_ref,    # (Hp, Hp)     f32   W_hh^T (padded)
                       b_h_ref,     # (1, Hp)      f32   b_ih + b_hh (padded)
                       w_fc_ref,    # (Hp, Vp)     f32   W_fc^T (padded)
                       b_fc_ref,    # (1, Vp)      f32   b_fc (pad cols = -1e30)
                       logits_ref,  # (TC, BB, Vp) f32   out
                       loss_ref,    # (1, 1)       f32   out (per batch block)
                       pre_ref,     # (TC, BB, Hp) f32   scratch: x @ W_ih + b
                       hs_ref,      # (TC, BB, Hp) f32   scratch: all h_t
                       h_ref,       # (BB, Hp)     f32   scratch: h carry
                       nll_ref,     # (BB, 1)      f32   scratch: NLL accumulator
                       *, T_real, B_real):
    TC, BB, Ep = x_ref.shape
    Hp = w_hh_ref.shape[0]
    Vp = w_fc_ref.shape[1]

    bb = pl.program_id(0)   # batch block (parallel)
    tt = pl.program_id(1)   # time chunk  (arbitrary / serial)

    # ---- init carries at the first time chunk --------------------------------
    @pl.when(tt == 0)
    def _():
        h_ref[...] = jnp.zeros_like(h_ref)      # PyTorch init_hidden -> zeros
        nll_ref[...] = jnp.zeros_like(nll_ref)

    # ---- input projection hoisted out of the recurrence ----------------------
    x2d = x_ref[...].reshape(TC * BB, Ep)
    pre = jnp.dot(x2d, w_ih_ref[...],
                  preferred_element_type=jnp.float32) + b_h_ref[...]
    pre_ref[...] = pre.reshape(TC, BB, Hp)

    # ---- serial recurrence: only h @ W_hh + tanh on the critical path --------
    w_hh = w_hh_ref[...]

    def step(t, h):
        h = jnp.tanh(pre_ref[t] +
                     jnp.dot(h, w_hh, preferred_element_type=jnp.float32))
        hs_ref[t] = h
        return h

    h_ref[...] = jax.lax.fori_loop(0, TC, step, h_ref[...], unroll=True)

    # ---- fc head: one big matmul per chunk ------------------------------------
    hs2d = hs_ref[...].reshape(TC * BB, Hp)
    logits2d = (jnp.dot(hs2d, w_fc_ref[...],
                        preferred_element_type=jnp.float32) + b_fc_ref[...])
    logits3 = logits2d.reshape(TC, BB, Vp)
    logits_ref[...] = logits3

    # ---- vectorized cross-entropy for the whole chunk -------------------------
    m = jnp.max(logits3, axis=-1, keepdims=True)                          # (TC,BB,1)
    lse = m + jnp.log(jnp.sum(jnp.exp(logits3 - m), axis=-1, keepdims=True))
    onehot = (jax.lax.broadcasted_iota(jnp.int32, (TC, BB, Vp), 2)
              == y_ref[...]).astype(jnp.float32)                          # (TC,BB,Vp)
    tgt = jnp.sum(logits3 * onehot, axis=-1, keepdims=True)               # (TC,BB,1)

    # mask out padded time steps / padded batch rows
    t_idx = tt * TC + jax.lax.broadcasted_iota(jnp.int32, (TC, BB, 1), 0)
    b_idx = bb * BB + jax.lax.broadcasted_iota(jnp.int32, (TC, BB, 1), 1)
    valid = jnp.logical_and(t_idx < T_real, b_idx < B_real).astype(jnp.float32)

    nll_ref[...] += jnp.sum((lse - tgt) * valid, axis=0)                  # (BB,1)

    # ---- finalize loss at the last time chunk ---------------------------------
    @pl.when(tt == pl.num_programs(1) - 1)
    def _():
        loss_ref[...] = (jnp.sum(nll_ref[...], axis=0, keepdims=True)
                         / jnp.float32(T_real * B_real))


# ----------------------------------------------------------------------------
# Wrapper: embedding gather, padding / layout, pallas_call
# ----------------------------------------------------------------------------
def _pad_to(a, shape, value=0.0):
    pads = [(0, s - d) for d, s in zip(a.shape, shape)]
    return jnp.pad(a, pads, constant_values=value)


def _round_up(x, m):
    return (x + m - 1) // m * m


def vanilla_rnn_forward(x_ids, y_ids, params, *, t_chunk=4, b_blk=8):
    emb_table = params["embedding"]            # (V, E)
    w_ih, w_hh = params["w_ih"], params["w_hh"]
    b_ih, b_hh = params["b_ih"], params["b_hh"]
    w_fc, b_fc = params["w_fc"], params["b_fc"]

    B, T = x_ids.shape
    V, E = emb_table.shape
    H = w_hh.shape[0]

    LANE = 128
    Bp = _round_up(B, b_blk)
    Tp = _round_up(T, t_chunk)
    Ep = _round_up(E, LANE)
    Hp = _round_up(H, LANE)
    Vp = _round_up(V, LANE)
    n_b = Bp // b_blk
    n_t = Tp // t_chunk

    # Embedding lookup (glue) + time-major layout + padding for the kernel.
    x_emb = jnp.take(emb_table, x_ids, axis=0)                     # (B, T, E)
    x_tbe = jnp.transpose(x_emb, (1, 0, 2)).astype(jnp.float32)    # (T, B, E)
    x_pad = _pad_to(x_tbe, (Tp, Bp, Ep))                           # (Tp,Bp,Ep)

    y_tb = _pad_to(jnp.transpose(y_ids, (1, 0)).astype(jnp.int32), (Tp, Bp))
    y_pad = y_tb[:, :, None]                                       # (Tp,Bp,1)

    # Pre-transposed, padded weights (zeros are inert; padded fc bias = -1e30).
    w_ih_t = _pad_to(jnp.asarray(w_ih.T, jnp.float32), (Ep, Hp))
    w_hh_t = _pad_to(jnp.asarray(w_hh.T, jnp.float32), (Hp, Hp))
    b_h = _pad_to(jnp.asarray(b_ih + b_hh, jnp.float32).reshape(1, H), (1, Hp))
    w_fc_t = _pad_to(jnp.asarray(w_fc.T, jnp.float32), (Hp, Vp))
    b_fc_p = _pad_to(jnp.asarray(b_fc, jnp.float32).reshape(1, V), (1, Vp),
                     value=_NEG)

    kernel = functools.partial(vanilla_rnn_kernel, T_real=T, B_real=B)

    logits_pad, loss_blk = pl.pallas_call(
        kernel,
        out_shape=(jax.ShapeDtypeStruct((Tp, Bp, Vp), jnp.float32),
                   jax.ShapeDtypeStruct((n_b, 1), jnp.float32)),
        grid=(n_b, n_t),
        in_specs=[
            pl.BlockSpec((t_chunk, b_blk, Ep), lambda b, t: (t, b, 0)),
            pl.BlockSpec((t_chunk, b_blk, 1), lambda b, t: (t, b, 0)),
            pl.BlockSpec((Ep, Hp), lambda b, t: (0, 0)),
            pl.BlockSpec((Hp, Hp), lambda b, t: (0, 0)),
            pl.BlockSpec((1, Hp), lambda b, t: (0, 0)),
            pl.BlockSpec((Hp, Vp), lambda b, t: (0, 0)),
            pl.BlockSpec((1, Vp), lambda b, t: (0, 0)),
        ],
        out_specs=(
            pl.BlockSpec((t_chunk, b_blk, Vp), lambda b, t: (t, b, 0)),
            pl.BlockSpec((1, 1), lambda b, t: (b, 0)),
        ),
        scratch_shapes=[
            pltpu.VMEM((t_chunk, b_blk, Hp), jnp.float32),   # pre_ref
            pltpu.VMEM((t_chunk, b_blk, Hp), jnp.float32),   # hs_ref
            pltpu.VMEM((b_blk, Hp), jnp.float32),            # h carry
            pltpu.VMEM((b_blk, 1), jnp.float32),             # nll accumulator
        ],
        compiler_params=pltpu.CompilerParams(
            dimension_semantics=("parallel", "arbitrary")),
    )(x_pad, y_pad, w_ih_t, w_hh_t, b_h, w_fc_t, b_fc_p)

    logits = jnp.transpose(logits_pad[:T, :B, :V], (1, 0, 2))      # (B, T, V)
    loss = jnp.sum(loss_blk)   # each block already divided by B*T
    return logits, loss


# ----------------------------------------------------------------------------
# Pure-JAX reference (mirrors the PyTorch forward exactly)
# ----------------------------------------------------------------------------
def reference_forward(x_ids, y_ids, params):
    emb = jnp.take(params["embedding"], x_ids, axis=0)             # (B, T, E)
    B, T, _ = emb.shape
    H = params["w_hh"].shape[0]
    h = jnp.zeros((B, H), jnp.float32)
    outs = []
    for t in range(T):
        h = jnp.tanh(emb[:, t] @ params["w_ih"].T + params["b_ih"]
                     + h @ params["w_hh"].T + params["b_hh"])
        outs.append(h)
    out = jnp.stack(outs, axis=1)                                  # (B, T, H)
    logits = out @ params["w_fc"].T + params["b_fc"]               # (B, T, V)
    lse = jax.scipy.special.logsumexp(logits, axis=-1)             # (B, T)
    tgt = jnp.take_along_axis(logits, y_ids[..., None], axis=-1)[..., 0]
    loss = jnp.mean(lse - tgt)
    return logits, loss


# ----------------------------------------------------------------------------
def init_params(key, vocab_size, embedding_dim, hidden_size):
    ks = jax.random.split(key, 7)
    s = 1.0 / np.sqrt(hidden_size)
    return {
        "embedding": jax.random.normal(ks[0], (vocab_size, embedding_dim), jnp.float32),
        "w_ih": jax.random.uniform(ks[1], (hidden_size, embedding_dim), jnp.float32, -s, s),
        "w_hh": jax.random.uniform(ks[2], (hidden_size, hidden_size), jnp.float32, -s, s),
        "b_ih": jax.random.uniform(ks[3], (hidden_size,), jnp.float32, -s, s),
        "b_hh": jax.random.uniform(ks[4], (hidden_size,), jnp.float32, -s, s),
        "w_fc": jax.random.uniform(ks[5], (vocab_size, hidden_size), jnp.float32, -s, s),
        "b_fc": jax.random.uniform(ks[6], (vocab_size,), jnp.float32, -s, s),
    }


if __name__ == "__main__":
    vocab_size, embedding_dim, hidden_size = 64, 16, 32
    batch, seq = 2, 10   # seq not a multiple of the time chunk -> exercises masking

    key = jax.random.PRNGKey(0)
    kp, kx, ky = jax.random.split(key, 3)
    params = init_params(kp, vocab_size, embedding_dim, hidden_size)
    x_ids = jax.random.randint(kx, (batch, seq), 0, vocab_size, dtype=jnp.int32)
    y_ids = jax.random.randint(ky, (batch, seq), 0, vocab_size, dtype=jnp.int32)

    logits, loss = jax.jit(vanilla_rnn_forward)(x_ids, y_ids, params)
    jax.block_until_ready((logits, loss))

    ref_logits, ref_loss = reference_forward(x_ids, y_ids, params)
    np.testing.assert_allclose(np.asarray(logits), np.asarray(ref_logits),
                               rtol=1e-3, atol=1e-3)
    np.testing.assert_allclose(float(loss), float(ref_loss), rtol=1e-3, atol=1e-3)

    print("KERNEL_OK")
</pallas_src>

<mosaic_0001>
module attributes {stable_mosaic.version = 11 : i64} {
  func.func @vanilla_rnn_kernel(%arg0: i32, %arg1: i32, %arg2: memref<4x8x128xf32, #tpu.memory_space<vmem>>, %arg3: memref<4x8x1xi32, #tpu.memory_space<vmem>>, %arg4: memref<128x128xf32, #tpu.memory_space<vmem>>, %arg5: memref<128x128xf32, #tpu.memory_space<vmem>>, %arg6: memref<1x128xf32, #tpu.memory_space<vmem>>, %arg7: memref<128x128xf32, #tpu.memory_space<vmem>>, %arg8: memref<1x128xf32, #tpu.memory_space<vmem>>, %arg9: memref<4x8x128xf32, #tpu.memory_space<vmem>>, %arg10: memref<1x1xf32, #tpu.memory_space<vmem>>, %arg11: memref<4x8x128xf32, #tpu.memory_space<vmem>>, %arg12: memref<4x8x128xf32, #tpu.memory_space<vmem>>, %arg13: memref<8x128xf32, #tpu.memory_space<vmem>>, %arg14: memref<8x1xf32, #tpu.memory_space<vmem>>) attributes {dimension_semantics = [#tpu.dimension_semantics<parallel>, #tpu.dimension_semantics<arbitrary>], iteration_bounds = array<i64: 1, 3>, scalar_prefetch = 0 : i64, scratch_operands = 4 : i64, tpu.core_type = #tpu.core_type<tc>, window_params = [{transform_indices = @transform_0, window_bounds = array<i64: 4, 8, 128>}, {transform_indices = @transform_1, window_bounds = array<i64: 4, 8, 1>}, {pipeline_mode = #tpu.pipeline_mode<synchronous>, transform_indices = @transform_2, window_bounds = array<i64: 128, 128>}, {pipeline_mode = #tpu.pipeline_mode<synchronous>, transform_indices = @transform_3, window_bounds = array<i64: 128, 128>}, {pipeline_mode = #tpu.pipeline_mode<synchronous>, transform_indices = @transform_4, window_bounds = array<i64: 1, 128>}, {pipeline_mode = #tpu.pipeline_mode<synchronous>, transform_indices = @transform_5, window_bounds = array<i64: 128, 128>}, {pipeline_mode = #tpu.pipeline_mode<synchronous>, transform_indices = @transform_6, window_bounds = array<i64: 1, 128>}, {transform_indices = @transform_7, window_bounds = array<i64: 4, 8, 128>}, {transform_indices = @transform_8, window_bounds = array<i64: 1, 1>}]} {
    %c0_i32 = arith.constant 0 : i32
    %0 = arith.cmpi eq, %arg1, %c0_i32 : i32
    %1 = arith.extui %0 : i1 to i32
    %c0_i32_0 = arith.constant 0 : i32
    %2 = arith.cmpi ne, %1, %c0_i32_0 : i32
    scf.if %2 {
      %cst_63 = arith.constant 0.000000e+00 : f32
      %106 = vector.broadcast %cst_63 : f32 to vector<8x128xf32>
      %c0_64 = arith.constant 0 : index
      %c0_65 = arith.constant 0 : index
      %107 = vector.load %arg13[%c0_64, %c0_65] : memref<8x128xf32, #tpu.memory_space<vmem>>, vector<8x128xf32>
      tpu.vector_store %arg13[%c0_64, %c0_65], %106 {strides = array<i32>} : memref<8x128xf32, #tpu.memory_space<vmem>>, vector<8x128xf32>,
      %cst_66 = arith.constant 0.000000e+00 : f32
      %108 = vector.broadcast %cst_66 : f32 to vector<8x1xf32>
      %c0_67 = arith.constant 0 : index
      %c0_68 = arith.constant 0 : index
      %109 = vector.load %arg14[%c0_67, %c0_68] : memref<8x1xf32, #tpu.memory_space<vmem>>, vector<8x1xf32>
      tpu.vector_store %arg14[%c0_67, %c0_68], %108 {strides = array<i32>} : memref<8x1xf32, #tpu.memory_space<vmem>>, vector<8x1xf32>,
    } else {
    }
    %c0 = arith.constant 0 : index
    %c0_1 = arith.constant 0 : index
    %c0_2 = arith.constant 0 : index
    %3 = vector.load %arg2[%c0, %c0_1, %c0_2] : memref<4x8x128xf32, #tpu.memory_space<vmem>>, vector<4x8x128xf32>
    %4 = vector.shape_cast %3 : vector<4x8x128xf32> to vector<32x128xf32>
    %c0_3 = arith.constant 0 : index
    %c0_4 = arith.constant 0 : index
    %5 = vector.load %arg4[%c0_3, %c0_4] : memref<128x128xf32, #tpu.memory_space<vmem>>, vector<128x128xf32>
    %cst = arith.constant dense<0.000000e+00> : vector<32x128xf32>
    %6 = tpu.matmul %4, %5, %cst {dimension_numbers = #tpu.dot_dimension_numbers<[1], [0], [0], [1], [0, 0, 1, 1], [], []>} : vector<32x128xf32>, vector<128x128xf32>, vector<32x128xf32> -> vector<32x128xf32>
    %c0_5 = arith.constant 0 : index
    %c0_6 = arith.constant 0 : index
    %7 = vector.load %arg6[%c0_5, %c0_6] : memref<1x128xf32, #tpu.memory_space<vmem>>, vector<1x128xf32>
    %8 = vector.broadcast %7 : vector<1x128xf32> to vector<32x128xf32>
    %9 = arith.addf %6, %8 : vector<32x128xf32>
    %10 = vector.shape_cast %9 : vector<32x128xf32> to vector<4x8x128xf32>
    %c0_7 = arith.constant 0 : index
    %c0_8 = arith.constant 0 : index
    %c0_9 = arith.constant 0 : index
    %11 = vector.load %arg11[%c0_7, %c0_8, %c0_9] : memref<4x8x128xf32, #tpu.memory_space<vmem>>, vector<4x8x128xf32>
    tpu.vector_store %arg11[%c0_7, %c0_8, %c0_9], %10 {strides = array<i32>} : memref<4x8x128xf32, #tpu.memory_space<vmem>>, vector<4x8x128xf32>,
    %c0_10 = arith.constant 0 : index
    %c0_11 = arith.constant 0 : index
    %12 = vector.load %arg5[%c0_10, %c0_11] : memref<128x128xf32, #tpu.memory_space<vmem>>, vector<128x128xf32>
    %c0_12 = arith.constant 0 : index
    %c0_13 = arith.constant 0 : index
    %13 = vector.load %arg13[%c0_12, %c0_13] : memref<8x128xf32, #tpu.memory_space<vmem>>, vector<8x128xf32>
    %c0_i32_14 = arith.constant 0 : i32
    %14 = arith.index_cast %c0_i32_14 : i32 to index
    %c0_15 = arith.constant 0 : index
    %c0_16 = arith.constant 0 : index
    %15 = vector.load %arg11[%14, %c0_15, %c0_16] : memref<4x8x128xf32, #tpu.memory_space<vmem>>, vector<1x8x128xf32>
    %16 = vector.shape_cast %15 : vector<1x8x128xf32> to vector<8x128xf32>
    %cst_17 = arith.constant dense<0.000000e+00> : vector<8x128xf32>
    %17 = tpu.matmul %13, %12, %cst_17 {dimension_numbers = #tpu.dot_dimension_numbers<[1], [0], [0], [1], [0, 0, 1, 1], [], []>} : vector<8x128xf32>, vector<128x128xf32>, vector<8x128xf32> -> vector<8x128xf32>
    %18 = arith.addf %16, %17 : vector<8x128xf32>
    %19 = math.tanh %18 : vector<8x128xf32>
    %20 = arith.index_cast %c0_i32_14 : i32 to index
    %c0_18 = arith.constant 0 : index
    %c0_19 = arith.constant 0 : index
    %21 = vector.load %arg12[%20, %c0_18, %c0_19] : memref<4x8x128xf32, #tpu.memory_space<vmem>>, vector<1x8x128xf32>
    %22 = vector.shape_cast %21 : vector<1x8x128xf32> to vector<8x128xf32>
    %23 = vector.shape_cast %19 : vector<8x128xf32> to vector<1x8x128xf32>
    tpu.vector_store %arg12[%20, %c0_18, %c0_19], %23 {strides = array<i32>} : memref<4x8x128xf32, #tpu.memory_space<vmem>>, vector<1x8x128xf32>,
    %c1_i32 = arith.constant 1 : i32
    %24 = arith.index_cast %c1_i32 : i32 to index
    %c0_20 = arith.constant 0 : index
    %c0_21 = arith.constant 0 : index
    %25 = vector.load %arg11[%24, %c0_20, %c0_21] : memref<4x8x128xf32, #tpu.memory_space<vmem>>, vector<1x8x128xf32>
    %26 = vector.shape_cast %25 : vector<1x8x128xf32> to vector<8x128xf32>
    %cst_22 = arith.constant dense<0.000000e+00> : vector<8x128xf32>
    %27 = tpu.matmul %19, %12, %cst_22 {dimension_numbers = #tpu.dot_dimension_numbers<[1], [0], [0], [1], [0, 0, 1, 1], [], []>} : vector<8x128xf32>, vector<128x128xf32>, vector<8x128xf32> -> vector<8x128xf32>
    %28 = arith.addf %26, %27 : vector<8x128xf32>
    %29 = math.tanh %28 : vector<8x128xf32>
    %30 = arith.index_cast %c1_i32 : i32 to index
    %c0_23 = arith.constant 0 : index
    %c0_24 = arith.constant 0 : index
    %31 = vector.load %arg12[%30, %c0_23, %c0_24] : memref<4x8x128xf32, #tpu.memory_space<vmem>>, vector<1x8x128xf32>
    %32 = vector.shape_cast %31 : vector<1x8x128xf32> to vector<8x128xf32>
    %33 = vector.shape_cast %29 : vector<8x128xf32> to vector<1x8x128xf32>
    tpu.vector_store %arg12[%30, %c0_23, %c0_24], %33 {strides = array<i32>} : memref<4x8x128xf32, #tpu.memory_space<vmem>>, vector<1x8x128xf32>,
    %c2_i32 = arith.constant 2 : i32
    %34 = arith.index_cast %c2_i32 : i32 to index
    %c0_25 = arith.constant 0 : index
    %c0_26 = arith.constant 0 : index
    %35 = vector.load %arg11[%34, %c0_25, %c0_26] : memref<4x8x128xf32, #tpu.memory_space<vmem>>, vector<1x8x128xf32>
    %36 = vector.shape_cast %35 : vector<1x8x128xf32> to vector<8x128xf32>
    %cst_27 = arith.constant dense<0.000000e+00> : vector<8x128xf32>
    %37 = tpu.matmul %29, %12, %cst_27 {dimension_numbers = #tpu.dot_dimension_numbers<[1], [0], [0], [1], [0, 0, 1, 1], [], []>} : vector<8x128xf32>, vector<128x128xf32>, vector<8x128xf32> -> vector<8x128xf32>
    %38 = arith.addf %36, %37 : vector<8x128xf32>
    %39 = math.tanh %38 : vector<8x128xf32>
    %40 = arith.index_cast %c2_i32 : i32 to index
    %c0_28 = arith.constant 0 : index
    %c0_29 = arith.constant 0 : index
    %41 = vector.load %arg12[%40, %c0_28, %c0_29] : memref<4x8x128xf32, #tpu.memory_space<vmem>>, vector<1x8x128xf32>
    %42 = vector.shape_cast %41 : vector<1x8x128xf32> to vector<8x128xf32>
    %43 = vector.shape_cast %39 : vector<8x128xf32> to vector<1x8x128xf32>
    tpu.vector_store %arg12[%40, %c0_28, %c0_29], %43 {strides = array<i32>} : memref<4x8x128xf32, #tpu.memory_space<vmem>>, vector<1x8x128xf32>,
    %c3_i32 = arith.constant 3 : i32
    %44 = arith.index_cast %c3_i32 : i32 to index
    %c0_30 = arith.constant 0 : index
    %c0_31 = arith.constant 0 : index
    %45 = vector.load %arg11[%44, %c0_30, %c0_31] : memref<4x8x128xf32, #tpu.memory_space<vmem>>, vector<1x8x128xf32>
    %46 = vector.shape_cast %45 : vector<1x8x128xf32> to vector<8x128xf32>
    %cst_32 = arith.constant dense<0.000000e+00> : vector<8x128xf32>
    %47 = tpu.matmul %39, %12, %cst_32 {dimension_numbers = #tpu.dot_dimension_numbers<[1], [0], [0], [1], [0, 0, 1, 1], [], []>} : vector<8x128xf32>, vector<128x128xf32>, vector<8x128xf32> -> vector<8x128xf32>
    %48 = arith.addf %46, %47 : vector<8x128xf32>
    %49 = math.tanh %48 : vector<8x128xf32>
    %50 = arith.index_cast %c3_i32 : i32 to index
    %c0_33 = arith.constant 0 : index
    %c0_34 = arith.constant 0 : index
    %51 = vector.load %arg12[%50, %c0_33, %c0_34] : memref<4x8x128xf32, #tpu.memory_space<vmem>>, vector<1x8x128xf32>
    %52 = vector.shape_cast %51 : vector<1x8x128xf32> to vector<8x128xf32>
    %53 = vector.shape_cast %49 : vector<8x128xf32> to vector<1x8x128xf32>
    tpu.vector_store %arg12[%50, %c0_33, %c0_34], %53 {strides = array<i32>} : memref<4x8x128xf32, #tpu.memory_space<vmem>>, vector<1x8x128xf32>,
    %c4_i32 = arith.constant 4 : i32
    %c0_35 = arith.constant 0 : index
    %c0_36 = arith.constant 0 : index
    %54 = vector.load %arg13[%c0_35, %c0_36] : memref<8x128xf32, #tpu.memory_space<vmem>>, vector<8x128xf32>
    tpu.vector_store %arg13[%c0_35, %c0_36], %49 {strides = array<i32>} : memref<8x128xf32, #tpu.memory_space<vmem>>, vector<8x128xf32>,
    %c0_37 = arith.constant 0 : index
    %c0_38 = arith.constant 0 : index
    %c0_39 = arith.constant 0 : index
    %55 = vector.load %arg12[%c0_37, %c0_38, %c0_39] : memref<4x8x128xf32, #tpu.memory_space<vmem>>, vector<4x8x128xf32>
    %56 = vector.shape_cast %55 : vector<4x8x128xf32> to vector<32x128xf32>
    %c0_40 = arith.constant 0 : index
    %c0_41 = arith.constant 0 : index
    %57 = vector.load %arg7[%c0_40, %c0_41] : memref<128x128xf32, #tpu.memory_space<vmem>>, vector<128x128xf32>
    %cst_42 = arith.constant dense<0.000000e+00> : vector<32x128xf32>
    %58 = tpu.matmul %56, %57, %cst_42 {dimension_numbers = #tpu.dot_dimension_numbers<[1], [0], [0], [1], [0, 0, 1, 1], [], []>} : vector<32x128xf32>, vector<128x128xf32>, vector<32x128xf32> -> vector<32x128xf32>
    %c0_43 = arith.constant 0 : index
    %c0_44 = arith.constant 0 : index
    %59 = vector.load %arg8[%c0_43, %c0_44] : memref<1x128xf32, #tpu.memory_space<vmem>>, vector<1x128xf32>
    %60 = vector.broadcast %59 : vector<1x128xf32> to vector<32x128xf32>
    %61 = arith.addf %58, %60 : vector<32x128xf32>
    %62 = vector.shape_cast %61 : vector<32x128xf32> to vector<4x8x128xf32>
    %c0_45 = arith.constant 0 : index
    %c0_46 = arith.constant 0 : index
    %c0_47 = arith.constant 0 : index
    %63 = vector.load %arg9[%c0_45, %c0_46, %c0_47] : memref<4x8x128xf32, #tpu.memory_space<vmem>>, vector<4x8x128xf32>
    tpu.vector_store %arg9[%c0_45, %c0_46, %c0_47], %62 {strides = array<i32>} : memref<4x8x128xf32, #tpu.memory_space<vmem>>, vector<4x8x128xf32>,
    %cst_48 = arith.constant dense<0xFF800000> : vector<4x8xf32>
    %64 = vector.multi_reduction <maximumf>, %62, %cst_48 [2] : vector<4x8x128xf32> to vector<4x8xf32>
    %65 = vector.shape_cast %64 : vector<4x8xf32> to vector<4x8x1xf32>
    %66 = vector.broadcast %65 : vector<4x8x1xf32> to vector<4x8x128xf32>
    %67 = arith.subf %62, %66 : vector<4x8x128xf32>
    %68 = math.exp %67 : vector<4x8x128xf32>
    %cst_49 = arith.constant dense<0.000000e+00> : vector<4x8xf32>
    %69 = vector.multi_reduction <add>, %68, %cst_49 [2] : vector<4x8x128xf32> to vector<4x8xf32>
    %70 = vector.shape_cast %69 : vector<4x8xf32> to vector<4x8x1xf32>
    %71 = math.log %70 : vector<4x8x1xf32>
    %72 = arith.addf %65, %71 : vector<4x8x1xf32>
    %73 = tpu.iota {dimensions = array<i32: 2>} : vector<4x8x128xi32>
    %c0_50 = arith.constant 0 : index
    %c0_51 = arith.constant 0 : index
    %c0_52 = arith.constant 0 : index
    %74 = vector.load %arg3[%c0_50, %c0_51, %c0_52] : memref<4x8x1xi32, #tpu.memory_space<vmem>>, vector<4x8x1xi32>
    %75 = vector.broadcast %74 : vector<4x8x1xi32> to vector<4x8x128xi32>
    %76 = arith.cmpi eq, %73, %75 : vector<4x8x128xi32>
    %77 = arith.extui %76 : vector<4x8x128xi1> to vector<4x8x128xi32>
    %78 = arith.sitofp %77 : vector<4x8x128xi32> to vector<4x8x128xf32>
    %79 = arith.mulf %62, %78 : vector<4x8x128xf32>
    %cst_53 = arith.constant dense<0.000000e+00> : vector<4x8xf32>
    %80 = vector.multi_reduction <add>, %79, %cst_53 [2] : vector<4x8x128xf32> to vector<4x8xf32>
    %81 = vector.shape_cast %80 : vector<4x8xf32> to vector<4x8x1xf32>
    %c4_i32_54 = arith.constant 4 : i32
    %82 = arith.muli %arg1, %c4_i32_54 : i32
    %83 = tpu.iota {dimensions = array<i32: 0>} : vector<4x8x1xi32>
    %84 = vector.broadcast %82 : i32 to vector<4x8x1xi32>
    %85 = arith.addi %84, %83 : vector<4x8x1xi32>
    %c8_i32 = arith.constant 8 : i32
    %86 = arith.muli %arg0, %c8_i32 : i32
    %87 = tpu.iota {dimensions = array<i32: 1>} : vector<4x8x1xi32>
    %88 = vector.broadcast %86 : i32 to vector<4x8x1xi32>
    %89 = arith.addi %88, %87 : vector<4x8x1xi32>
    %c10_i32 = arith.constant 10 : i32
    %90 = vector.broadcast %c10_i32 : i32 to vector<4x8x1xi32>
    %91 = arith.cmpi slt, %85, %90 : vector<4x8x1xi32>
    %c2_i32_55 = arith.constant 2 : i32
    %92 = vector.broadcast %c2_i32_55 : i32 to vector<4x8x1xi32>
    %93 = arith.cmpi slt, %89, %92 : vector<4x8x1xi32>
    %94 = arith.andi %91, %93 : vector<4x8x1xi1>
    %95 = arith.extui %94 : vector<4x8x1xi1> to vector<4x8x1xi32>
    %96 = arith.sitofp %95 : vector<4x8x1xi32> to vector<4x8x1xf32>
    %c0_56 = arith.constant 0 : index
    %c0_57 = arith.constant 0 : index
    %97 = vector.load %arg14[%c0_56, %c0_57] : memref<8x1xf32, #tpu.memory_space<vmem>>, vector<8x1xf32>
    %98 = arith.subf %72, %81 : vector<4x8x1xf32>
    %99 = arith.mulf %98, %96 : vector<4x8x1xf32>
    %cst_58 = arith.constant dense<0.000000e+00> : vector<8x1xf32>
    %100 = vector.multi_reduction <add>, %99, %cst_58 [0] : vector<4x8x1xf32> to vector<8x1xf32>
    %101 = arith.addf %97, %100 : vector<8x1xf32>
    %c0_59 = arith.constant 0 : index
    %c0_60 = arith.constant 0 : index
    %102 = vector.load %arg14[%c0_59, %c0_60] : memref<8x1xf32, #tpu.memory_space<vmem>>, vector<8x1xf32>
    tpu.vector_store %arg14[%c0_59, %c0_60], %101 {strides = array<i32>} : memref<8x1xf32, #tpu.memory_space<vmem>>, vector<8x1xf32>,
    %c2_i32_61 = arith.constant 2 : i32
    %103 = arith.cmpi eq, %arg1, %c2_i32_61 : i32
    %104 = arith.extui %103 : i1 to i32
    %c0_i32_62 = arith.constant 0 : i32
    %105 = arith.cmpi ne, %104, %c0_i32_62 : i32
    scf.if %105 {
      %c0_63 = arith.constant 0 : index
      %c0_64 = arith.constant 0 : index
      %106 = vector.load %arg14[%c0_63, %c0_64] : memref<8x1xf32, #tpu.memory_space<vmem>>, vector<8x1xf32>
      %cst_65 = arith.constant dense<0.000000e+00> : vector<1xf32>
      %107 = vector.multi_reduction <add>, %106, %cst_65 [0] : vector<8x1xf32> to vector<1xf32>
      %108 = vector.shape_cast %107 : vector<1xf32> to vector<1x1xf32>
      %cst_66 = arith.constant 2.000000e+01 : f32
      %109 = vector.broadcast %cst_66 : f32 to vector<1x1xf32>
      %110 = arith.divf %108, %109 : vector<1x1xf32>
      %c0_67 = arith.constant 0 : index
      %c0_68 = arith.constant 0 : index
      %111 = vector.load %arg10[%c0_67, %c0_68] : memref<1x1xf32, #tpu.memory_space<vmem>>, vector<1x1xf32>
      tpu.vector_store %arg10[%c0_67, %c0_68], %110 {strides = array<i32>} : memref<1x1xf32, #tpu.memory_space<vmem>>, vector<1x1xf32>,
    } else {
    }
    return
  }
  func.func @transform_0(%arg0: i32, %arg1: i32) -> (i32, i32, i32) {
    %c0_i32 = arith.constant 0 : i32
    %c0_i32_0 = arith.constant 0 : i32
    return %arg1, %arg0, %c0_i32 : i32, i32, i32
  }
  func.func @transform_1(%arg0: i32, %arg1: i32) -> (i32, i32, i32) {
    %c0_i32 = arith.constant 0 : i32
    %c0_i32_0 = arith.constant 0 : i32
    return %arg1, %arg0, %c0_i32 : i32, i32, i32
  }
  func.func @transform_2(%arg0: i32, %arg1: i32) -> (i32, i32) {
    %c0_i32 = arith.constant 0 : i32
    %c0_i32_0 = arith.constant 0 : i32
    %c0_i32_1 = arith.constant 0 : i32
    return %c0_i32, %c0_i32_0 : i32, i32
  }
  func.func @transform_3(%arg0: i32, %arg1: i32) -> (i32, i32) {
    %c0_i32 = arith.constant 0 : i32
    %c0_i32_0 = arith.constant 0 : i32
    %c0_i32_1 = arith.constant 0 : i32
    return %c0_i32, %c0_i32_0 : i32, i32
  }
  func.func @transform_4(%arg0: i32, %arg1: i32) -> (i32, i32) {
    %c0_i32 = arith.constant 0 : i32
    %c0_i32_0 = arith.constant 0 : i32
    %c0_i32_1 = arith.constant 0 : i32
    return %c0_i32, %c0_i32_0 : i32, i32
  }
  func.func @transform_5(%arg0: i32, %arg1: i32) -> (i32, i32) {
    %c0_i32 = arith.constant 0 : i32
    %c0_i32_0 = arith.constant 0 : i32
    %c0_i32_1 = arith.constant 0 : i32
    return %c0_i32, %c0_i32_0 : i32, i32
  }
  func.func @transform_6(%arg0: i32, %arg1: i32) -> (i32, i32) {
    %c0_i32 = arith.constant 0 : i32
    %c0_i32_0 = arith.constant 0 : i32
    %c0_i32_1 = arith.constant 0 : i32
    return %c0_i32, %c0_i32_0 : i32, i32
  }
  func.func @transform_7(%arg0: i32, %arg1: i32) -> (i32, i32, i32) {
    %c0_i32 = arith.constant 0 : i32
    %c0_i32_0 = arith.constant 0 : i32
    return %arg1, %arg0, %c0_i32 : i32, i32, i32
  }
  func.func @transform_8(%arg0: i32, %arg1: i32) -> (i32, i32) {
    %c0_i32 = arith.constant 0 : i32
    %c0_i32_0 = arith.constant 0 : i32
    return %arg0, %c0_i32 : i32, i32
  }
}

</mosaic_0001>

<bundles_post_ra>
// kernel: vanilla_rnn_forward.1
= control target key start
LH: loop header
LB: loop body
LE: loop exit
PB: predicated region body
PF: predicated region fallthrough
CT: control target
= control target key end

     0   :  { %14 = vsyncpa [#allocation7], 0  ;;  %s1876_s27 = smov 0   ;;  %s1878_s28 = smov 0   ;;  %s2252_s0 = inlined_call_operand.vmem [shape: f32[12,8,128], index: 0, kind: input, shape index: {}]   ;;  %s2253_s1 = inlined_call_operand.vmem [shape: s32[12,8,1], index: 1, kind: input, shape index: {}]   ;;  %s2254_s2 = inlined_call_operand.vmem [shape: f32[128,128], index: 2, kind: input, shape index: {}]   ;;  %s2255_s3 = inlined_call_operand.vmem [shape: f32[128,128], index: 3, kind: input, shape index: {}]   ;;  %s2256_s4 = inlined_call_operand.vmem [shape: f32[1,128], index: 4, kind: input, shape index: {}]   ;;  %s2257_s5 = inlined_call_operand.vmem [shape: f32[128,128], index: 5, kind: input, shape index: {}]   ;;  %s2258_s6 = inlined_call_operand.vmem [shape: f32[1,128], index: 6, kind: input, shape index: {}]   ;;  %s2259_s7 = inlined_call_operand.vmem [shape: f32[12,8,128], index: 7, kind: output, shape index: {0}]   ;;  %s2260_s8 = inlined_call_operand.hbm [shape: f32[1,1], index: 8, kind: output, shape index: {1}]  }
   0x1   :  { %s1880_s29 = smov 0  }
   0x2 LB: > { %s1197_s30 = sadd.s32 4294967295, %s1823_s29   ;;  %s29_s9 = sadd.s32 1, %s1819_s28  ;;  %s1823_s29 = sphi %s1880_s29, %s20_s29   ;;  %s1819_s28 = sphi %s1878_s28, %s2263_s28   ;;  %s1815_s27 = sphi %s1876_s27, %s2262_s27  }
   0x3   : > { %p30_p0 = scmp.ge.s32.totalorder %s29_s9, 3  ;;  %p1201_p1 = scmp.ge.s32.totalorder %s1823_s29, 1 }
   0x4   : > { %p302_p2 = scmp.lt.s32.totalorder %s1823_s29, 4 }
   0x5   : > { %s2265_s9 = smov (%p30_p0, %s29_s9), 0 }
   0x6   : > { %p303_p3 = pnand %p1201_p1, %p302_p2 }
   0x7   : > { %s1898_s10 = sshll.u32 (!%p303_p3), %s1815_s27, 2  ;;  %p1208_p5 = scmp.ne.s32.totalorder (!%p303_p3), %s1815_s27, 0 }
   0x8   : > { %306 = sbr.rel (%p303_p3) target bundleno = 1554 (0x612), region = 48  ;;  %p351_p4 = scmp.lt.s32.totalorder (!%p303_p3), %s1898_s10, 11 }
   0xf   : > { %s352_s11 = scalar_select %p351_p4, %s1898_s10, 11 }
  0x10   : > { %380 = sbr.rel (%p1208_p5) target bundleno = 23 (0x17), region = 52  ;;  %vm382_vm0 = vcmask (!%p1208_p5), 7168   ;;  %v1825_v0 = vmov (!%p1208_p5), 0.0  }
  0x11   : > { %s1203_s12 = sshll.u32 %s352_s11, 3  ;;  %381 = vst [vmem:[#allocation4] sm:$0xff] (!%p1208_p5), %v1825_v0  ;;  %383 = vst.msk [vmem:[#allocation5] sm:$0xff] (!%p1208_p5), %vm382_vm0, %v1825_v0 }
  0x12   : > { %s1905_s15 = scalar_lea.vmem %s2252_s0, %s1203_s12  ;;  %s1910_s18 = scalar_lea.vmem %s2253_s1, %s1203_s12 }
  0x13   : > { %s1915_s21 = scalar_lea.vmem %s2259_s7, %s1203_s12 }
  0x17 PF: > { %v388_v1 = vld [vmem:[%s2254_s2] sm:$0xff]  ;;  %v389_v2 = vld [vmem:[%s2254_s2 + $0x8] sm:$0xff]  ;;  %v1826_v5 = vmov 0.0|0.0   ;;  %v390_v7 = vld [vmem:[%s2254_s2 + $0x10] sm:$0xff]  ;;  %vm1827_vm1 = vmmov 0   ;;  %v1828_v9 = vmov 0.0  }
  0x18   : > { %v500_v3 = vld [vmem:[%s2255_s3] sm:$0xff]  ;;  %v1549_v4 = vpack.c.bf16 %v389_v2, %v388_v1  ;;  %1581 = vmatprep.subr.bf16.mxu1 %v1826_v5  ;;  %v501_v6 = vld [vmem:[%s2255_s3 + $0x8] sm:$0xff]  ;;  %v391_v8 = vld [vmem:[%s2254_s2 + $0x18] sm:$0xff]  ;;  %1403 = vmatprep.mubr.msk.f32.mxu1 %vm1827_vm1, %v1828_v9  ;;  %vm1058_vm15 = vcmask 7168   ;;  %p1220_p6 = scmp.ne.s32.totalorder %s1815_s27, 2 }
  0x19   : > { %v1939_v10 = vpack.c.bf16 %v501_v6, %v500_v3  ;;  %v1553_v11 = vpack.c.bf16 %v391_v8, %v390_v7  ;;  %v502_v12 = vld [vmem:[%s2255_s3 + $0x10] sm:$0xff]  ;;  %v503_v13 = vld [vmem:[%s2255_s3 + $0x18] sm:$0xff]  ;;  %v392_v14 = vld [vmem:[%s2254_s2 + $0x20] sm:$0xff]  ;;  %v1829_v7 = vmov 0   ;;  %vm1074_vm0 = vcmask (!%p1220_p6), 0  }
  0x1a   : > { %1550 = vmatprep.subr.bf16.mxu0 %v1549_v4  ;;  %v393_v15 = vld [vmem:[%s2254_s2 + $0x28] sm:$0xff]  ;;  %v1954_v16 = vpack.c.bf16 %v503_v13, %v502_v12  ;;  %v504_v18 = vld [vmem:[%s2255_s3 + $0x20] sm:$0xff]  ;;  %v394_v20 = vld [vmem:[%s2254_s2 + $0x30] sm:$0xff]  ;;  %1746 = vset.pattern.permute.xlu1 %v1829_v7 }
  0x1b   : > { %1552 = vmatpush3.bf16.msra.mxu0 %v1549_v4  ;;  %1583 = vmatpush3.bf16.msra.mxu1 %v1939_v10  ;;  %v1557_v17 = vpack.c.bf16 %v393_v15, %v392_v14  ;;  %v505_v19 = vld [vmem:[%s2255_s3 + $0x28] sm:$0xff]  ;;  %v395_v21 = vld [vmem:[%s2254_s2 + $0x38] sm:$0xff]  ;;  %v506_v24 = vld [vmem:[%s2255_s3 + $0x30] sm:$0xff] }
  0x1c   : > { %1554 = vmatprep.subr.bf16.mxu0 %v1553_v11  ;;  %1584 = vmatprep.subr.bf16.mxu1 %v1826_v5  ;;  %v1970_v22 = vpack.c.bf16 %v505_v19, %v504_v18  ;;  %v1561_v23 = vpack.c.bf16 %v395_v21, %v394_v20  ;;  %v507_v25 = vld [vmem:[%s2255_s3 + $0x38] sm:$0xff]  ;;  %v396_v26 = vld [vmem:[%s2254_s2 + $0x40] sm:$0xff]  ;;  %v397_v27 = vld [vmem:[%s2254_s2 + $0x48] sm:$0xff] }
  0x1d   : > { %v384_v28 = vld [vmem:[%s1905_s15] sm:$0xff]  ;;  %v1987_v29 = vpack.c.bf16 %v507_v25, %v506_v24  ;;  %v1565_v30 = vpack.c.bf16 %v397_v27, %v396_v26  ;;  %v509_v32 = vld [vmem:[%s2255_s3 + $0x48] sm:$0xff]  ;;  %v398_v33 = vld [vmem:[%s2254_s2 + $0x50] sm:$0xff]  ;;  %1745 = vset.pattern.permute.xlu0 %v1829_v7 }
  0x1e   : > { %1365 = vmatprep.mubr.f32.mxu0 %v384_v28  ;;  %v508_v31 = vld [vmem:[%s2255_s3 + $0x40] sm:$0xff]  ;;  %v399_v34 = vld [vmem:[%s2254_s2 + $0x58] sm:$0xff]  ;;  %v510_v37 = vld [vmem:[%s2255_s3 + $0x50] sm:$0xff] }
  0x1f   : > { %1556 = vmatpush3.bf16.msra.mxu0 %v1553_v11  ;;  %1586 = vmatpush3.bf16.msra.mxu1 %v1954_v16  ;;  %v2003_v35 = vpack.c.bf16 %v509_v32, %v508_v31  ;;  %v1569_v36 = vpack.c.bf16 %v399_v34, %v398_v33  ;;  %v511_v38 = vld [vmem:[%s2255_s3 + $0x58] sm:$0xff]  ;;  %v400_v39 = vld [vmem:[%s2254_s2 + $0x60] sm:$0xff]  ;;  %v401_v40 = vld [vmem:[%s2254_s2 + $0x68] sm:$0xff] }
  0x20   : > { %1558 = vmatprep.subr.bf16.mxu0 %v1557_v17  ;;  %1587 = vmatprep.subr.bf16.mxu1 %v1826_v5  ;;  %v2019_v41 = vpack.c.bf16 %v511_v38, %v510_v37  ;;  %v1573_v42 = vpack.c.bf16 %v401_v40, %v400_v39  ;;  %v512_v43 = vld [vmem:[%s2255_s3 + $0x60] sm:$0xff]  ;;  %v513_v44 = vld [vmem:[%s2255_s3 + $0x68] sm:$0xff]  ;;  %v402_v45 = vld [vmem:[%s2254_s2 + $0x70] sm:$0xff] }
  0x21   : > { %v403_v46 = vld [vmem:[%s2254_s2 + $0x78] sm:$0xff]  ;;  %v2035_v47 = vpack.c.bf16 %v513_v44, %v512_v43  ;;  %v514_v49 = vld [vmem:[%s2255_s3 + $0x70] sm:$0xff]  ;;  %v385_v52 = vld [vmem:[%s1905_s15 + $0x8] sm:$0xff] }
  0x22   : > { %v1577_v48 = vpack.c.bf16 %v403_v46, %v402_v45  ;;  %v515_v50 = vld [vmem:[%s2255_s3 + $0x78] sm:$0xff]  ;;  %v516_v53 = vld [vmem:[#allocation4] sm:$0xff]  ;;  %v386_v54 = vld [vmem:[%s1905_s15 + $0x10] sm:$0xff] }
  0x23   : > { %1560 = vmatpush3.bf16.msra.mxu0 %v1557_v17  ;;  %1589 = vmatpush3.bf16.msra.mxu1 %v1970_v22  ;;  %v2045_v51 = vpack.c.bf16 %v515_v50, %v514_v49  ;;  %v387_v55 = vld [vmem:[%s1905_s15 + $0x18] sm:$0xff]  ;;  %v2092_v56 = vld [vmem:[%s2256_s4] ss:$0 sm:$0xff]  ;;  %v825_v3 = vld [vmem:[%s2257_s5 + $0x8] sm:$0xff] }
  0x24   : > { %1562 = vmatprep.subr.bf16.mxu0 %v1561_v23  ;;  %1590 = vmatprep.subr.bf16.mxu1 %v1826_v5  ;;  %v824_v2 = vld [vmem:[%s2257_s5] sm:$0xff]  ;;  %v979_v6 = vld [vmem:[%s1910_s18 + $0x8] sm:$0xff]  ;;  %v826_v12 = vld [vmem:[%s2257_s5 + $0x10] sm:$0xff] }
  0x25   : > { %v1677_v4 = vpack.c.bf16 %v825_v3, %v824_v2  ;;  %986 = vperm.xlu1 %1746, %v979_v6   ;;  %v827_v13 = vld [vmem:[%s2257_s5 + $0x18] sm:$0xff]  ;;  %v829_v17 = vld [vmem:[%s2257_s5 + $0x28] sm:$0xff]  ;;  %v830_v19 = vld [vmem:[%s2257_s5 + $0x30] sm:$0xff] }
  0x26   : > { %v1681_v14 = vpack.c.bf16 %v827_v13, %v826_v12  ;;  %v831_v20 = vld [vmem:[%s2257_s5 + $0x38] sm:$0xff]  ;;  %v834_v25 = vld [vmem:[%s2257_s5 + $0x50] sm:$0xff]  ;;  %v836_v28 = vld [vmem:[%s2257_s5 + $0x60] sm:$0xff] }
  0x27   : > { %1564 = vmatpush3.bf16.msra.mxu0 %v1561_v23  ;;  %1592 = vmatpush3.bf16.msra.mxu1 %v1987_v29  ;;  %v1689_v21 = vpack.c.bf16 %v831_v20, %v830_v19  ;;  %v833_v23 = vld [vmem:[%s2257_s5 + $0x48] sm:$0xff]  ;;  %v835_v26 = vld [vmem:[%s2257_s5 + $0x58] sm:$0xff]  ;;  %v838_v31 = vld [vmem:[%s2257_s5 + $0x70] sm:$0xff] }
  0x28   : > { %1566 = vmatprep.subr.bf16.mxu0 %v1565_v30  ;;  %1593 = vmatprep.subr.bf16.mxu1 %v1826_v5  ;;  %v1697_v27 = vpack.c.bf16 %v835_v26, %v834_v25  ;;  %v839_v32 = vld [vmem:[%s2257_s5 + $0x78] sm:$0xff]  ;;  %v1210_v39 = vld [vmem:[%s2258_s6] ss:$0 sm:$0xff]  ;;  %v980_v45 = vld [vmem:[%s1910_s18 + $0x10] sm:$0xff]  ;;  %v1019_v26 = vstv %s1898_s10 }
  0x29   : > { %v1705_v33 = vpack.c.bf16 %v839_v32, %v838_v31  ;;  %v978_v44 = vld [vmem:[%s1910_s18] sm:$0xff]  ;;  %989 = vperm.xlu1 %1746, %v980_v45   ;;  %v981_v2 = vld [vmem:[%s1910_s18 + $0x18] sm:$0xff]  ;;  %v1021_v32 = vadd.s32 2, %v1019_v26  ;;  %vm1028_vm7 = vcmp.lt.s32.totalorder %v1019_v26, 10 }
  0x2b   : > { %1568 = vmatpush3.bf16.msra.mxu0 %v1565_v30  ;;  %1595 = vmatpush3.bf16.msra.mxu1 %v2003_v35  ;;  %vm1030_vm10 = vcmp.lt.s32.totalorder %v1021_v32, 10 }
  0x2c   : > { %1570 = vmatprep.subr.bf16.mxu0 %v1569_v36  ;;  %1596 = vmatprep.subr.bf16.mxu1 %v1826_v5 }
  0x2f   : > { %1572 = vmatpush3.bf16.msra.mxu0 %v1569_v36  ;;  %1598 = vmatpush3.bf16.msra.mxu1 %v2019_v41 }
  0x30   : > { %1574 = vmatprep.subr.bf16.mxu0 %v1573_v42  ;;  %1599 = vmatprep.subr.bf16.mxu1 %v1826_v5 }
  0x33   : > { %1576 = vmatpush3.bf16.msra.mxu0 %v1573_v42  ;;  %1601 = vmatpush3.bf16.msra.mxu1 %v2035_v47 }
  0x34   : > { %1578 = vmatprep.subr.bf16.mxu0 %v1577_v48  ;;  %1602 = vmatprep.subr.bf16.mxu1 %v1826_v5 }
  0x37   : > { %1580 = vmatpush3.bf16.msra.mxu0 %v1577_v48  ;;  %1604 = vmatpush3.bf16.msra.mxu1 %v2045_v51 }
  0x38   : > { %1605 = vmatprep.subr.bf16.mxu0 %v1826_v5  ;;  %1629 = vmatprep.subr.bf16.mxu1 %v1826_v5 }
  0x3a   : > { %1366 = vmatmul.mubr.f32.vlgmr.msra.gmra.mrb[0].mxu0 %v385_v52  ;;  %1404 = vmatmul.mubr.f32.vlgmr.msra.gmra.mrb[0].mxu1 %v516_v53 }
  0x3b   : > { %1607 = vmatpush3.bf16.msra.mxu0 %v1939_v10  ;;  %1631 = vmatpush3.bf16.msra.mxu1 %v1939_v10 }
  0x3c   : > { %1608 = vmatprep.subr.bf16.mxu0 %v1826_v5  ;;  %1632 = vmatprep.subr.bf16.mxu1 %v1826_v5 }
  0x3d   : > { %1473 = vmatprep.mubr.msk.f32.mxu1 %vm1827_vm1, %v1828_v9  ;;  %1368 = vmatprep.mubr.f32.mxu0 %v386_v54 }
  0x3e   : > { %1369 = vmatmul.mubr.f32.gmra.mrb[2].mxu0 %v387_v55 }
  0x3f   : > { %1610 = vmatpush3.bf16.msra.mxu0 %v1954_v16  ;;  %1634 = vmatpush3.bf16.msra.mxu1 %v1954_v16 }
  0x40   : > { %1611 = vmatprep.subr.bf16.mxu0 %v1826_v5  ;;  %1635 = vmatprep.subr.bf16.mxu1 %v1826_v5 }
  0x41   : > { %1438 = vmatprep.mubr.msk.f32.mxu0 %vm1827_vm1, %v1828_v9 }
  0x43   : > { %1613 = vmatpush3.bf16.msra.mxu0 %v1970_v22  ;;  %1637 = vmatpush3.bf16.msra.mxu1 %v1970_v22 }
  0x44   : > { %1614 = vmatprep.subr.bf16.mxu0 %v1826_v5  ;;  %1638 = vmatprep.subr.bf16.mxu1 %v1826_v5 }
  0x47   : > { %1616 = vmatpush3.bf16.msra.mxu0 %v1987_v29  ;;  %1640 = vmatpush3.bf16.msra.mxu1 %v1987_v29 }
  0x48   : > { %1617 = vmatprep.subr.bf16.mxu0 %v1826_v5  ;;  %1641 = vmatprep.subr.bf16.mxu1 %v1826_v5 }
  0x4b   : > { %1619 = vmatpush3.bf16.msra.mxu0 %v2003_v35  ;;  %1643 = vmatpush3.bf16.msra.mxu1 %v2003_v35 }
  0x4c   : > { %1620 = vmatprep.subr.bf16.mxu0 %v1826_v5  ;;  %1644 = vmatprep.subr.bf16.mxu1 %v1826_v5 }
  0x4f   : > { %1622 = vmatpush3.bf16.msra.mxu0 %v2019_v41  ;;  %1646 = vmatpush3.bf16.msra.mxu1 %v2019_v41 }
  0x50   : > { %1623 = vmatprep.subr.bf16.mxu0 %v1826_v5  ;;  %1647 = vmatprep.subr.bf16.mxu1 %v1826_v5 }
  0x53   : > { %1625 = vmatpush3.bf16.msra.mxu0 %v2035_v47  ;;  %1649 = vmatpush3.bf16.msra.mxu1 %v2035_v47 }
  0x54   : > { %1626 = vmatprep.subr.bf16.mxu0 %v1826_v5  ;;  %1650 = vmatprep.subr.bf16.mxu1 %v1826_v5 }
  0x57   : > { %1628 = vmatpush3.bf16.msra.mxu0 %v2045_v51  ;;  %1652 = vmatpush3.bf16.msra.mxu1 %v2045_v51 }
  0x58   : > { %1653 = vmatprep.subr.bf16.mxu0 %v1826_v5  ;;  %1678 = vmatprep.subr.bf16.mxu1 %v1677_v4 }
 0x10d   : > { %v1367_v57 = vpop.f32.mrb[0].mxu0  ;;  %v584_v58 = vpop.f32.mrb[0].mxu1 }
 0x10e   : > { %v477_v59 = vpop.f32.mrb[1].mxu0  ;;  %v1405_v60 = vpop.f32.mrb[1].mxu1 }
 0x10f   : > { %v478_v61 = vadd.f32 %v2092_v56, %v477_v59 }
 0x111   : > { %v588_v62 = vadd.f32 %v584_v58, %v478_v61  ;;  %v2112_v0 = vpop.f32.mrb[2].mxu0  ;;  %v976_v58 = vlaneseq }
 0x112   : > { %v487_v1 = vpop.f32.mrb[3].mxu0 }
 0x113   : > { %1747 = vtanh.f32 %v588_v62  ;;  %v488_v34 = vadd.f32 %v2092_v56, %v487_v1  ;;  %v977_v60 = vand.u32 127, %v976_v58 }
 0x11d   : > { %v1748_v63 = vpop.eup %1747 }
 0x11e   : > { %1439 = vmatmul.mubr.f32.vlgmr.msra.gmra.mrb[4].mxu0 %v1748_v63 }
 0x11f   : > { %1655 = vmatpush3.bf16.msra.mxu0 %v1939_v10  ;;  %1508 = vmatprep.mubr.msk.f32.mxu0 %vm1827_vm1, %v1828_v9 }
 0x120   : > { %1656 = vmatprep.subr.bf16.mxu0 %v1826_v5 }
 0x123   : > { %1658 = vmatpush3.bf16.msra.mxu0 %v1954_v16  ;;  %v828_v16 = vld [vmem:[%s2257_s5 + $0x20] sm:$0xff] }
 0x124   : > { %1659 = vmatprep.subr.bf16.mxu0 %v1826_v5  ;;  %v1685_v18 = vpack.c.bf16 %v829_v17, %v828_v16 }
 0x127   : > { %1661 = vmatpush3.bf16.msra.mxu0 %v1970_v22  ;;  %v832_v22 = vld [vmem:[%s2257_s5 + $0x40] sm:$0xff] }
 0x128   : > { %1662 = vmatprep.subr.bf16.mxu0 %v1826_v5  ;;  %v1693_v24 = vpack.c.bf16 %v833_v23, %v832_v22 }
 0x12b   : > { %1664 = vmatpush3.bf16.msra.mxu0 %v1987_v29  ;;  %v837_v29 = vld [vmem:[%s2257_s5 + $0x68] sm:$0xff] }
 0x12c   : > { %1665 = vmatprep.subr.bf16.mxu0 %v1826_v5  ;;  %v1701_v30 = vpack.c.bf16 %v837_v29, %v836_v28  ;;  %v1025_v29 = vshrl.u32 %v976_v58, 7 }
 0x12e   : > { %vm1032_vm8 = vcmp.lt.s32.totalorder %v1025_v29, 2 }
 0x12f   : > { %1667 = vmatpush3.bf16.msra.mxu0 %v2003_v35  ;;  %vm1033_vm11 = vmand %vm1028_vm7, %vm1032_vm8 }
 0x130   : > { %1668 = vmatprep.subr.bf16.mxu0 %v1826_v5  ;;  %vm1035_vm12 = vmand %vm1030_vm10, %vm1032_vm8 }
 0x133   : > { %1670 = vmatpush3.bf16.msra.mxu0 %v2019_v41 }
 0x134   : > { %1671 = vmatprep.subr.bf16.mxu0 %v1826_v5 }
 0x137   : > { %1673 = vmatpush3.bf16.msra.mxu0 %v2035_v47 }
 0x138   : > { %1674 = vmatprep.subr.bf16.mxu0 %v1826_v5  ;;  %v483_v5 = vadd.f32 %v1367_v57, %v2092_v56  ;;  %v987_v57 = vpop.permute.xlu1 %986 }
 0x139   : > { %vm995_vm4 = vcmp.eq.s32.totalorder %v977_v60, %v987_v57 }
 0x13a   : > { %v1212_v19 = vsel %vm995_vm4, 1.0, %v1828_v9 }
 0x13b   : > { %1676 = vmatpush3.bf16.msra.mxu0 %v2045_v51  ;;  %v493_v51 = vadd.f32 %v2112_v0, %v2092_v56 }
 0x13c   : > { %v990_v59 = vpop.permute.xlu1 %989 }
 0x13d   : > { %vm996_vm2 = vcmp.eq.s32.totalorder %v977_v60, %v990_v59 }
 0x1f1   : > { %v659_v8 = vpop.f32.mrb[4].mxu0 }
 0x1f2   : > { %v663_v10 = vadd.f32 %v659_v8, %v483_v5  ;;  %v1440_v11 = vpop.f32.mrb[5].mxu0 }
 0x1f4   : > { %1749 = vtanh.f32 %v663_v10 }
 0x1fe   : > { %v1750_v15 = vpop.eup %1749 }
 0x1ff   : > { %1474 = vmatmul.mubr.f32.vlgmr.msra.gmra.mrb[2].mxu1 %v1750_v15 }
 0x200   : > { %1680 = vmatpush3.bf16.msra.mxu1 %v1677_v4  ;;  %1543 = vmatprep.mubr.f32.mxu1 %v1748_v63  ;;  %v1213_v63 = vsel %vm996_vm2, 1.0, %v1828_v9 }
 0x201   : > { %1682 = vmatprep.subr.bf16.mxu1 %v1681_v14 }
 0x204   : > { %1684 = vmatpush3.bf16.msra.mxu1 %v1681_v14 }
 0x205   : > { %1686 = vmatprep.subr.bf16.mxu1 %v1685_v18 }
 0x208   : > { %1688 = vmatpush3.bf16.msra.mxu1 %v1685_v18 }
 0x209   : > { %1690 = vmatprep.subr.bf16.mxu1 %v1689_v21 }
 0x20c   : > { %1692 = vmatpush3.bf16.msra.mxu1 %v1689_v21 }
 0x20d   : > { %1694 = vmatprep.subr.bf16.mxu1 %v1693_v24 }
 0x210   : > { %1696 = vmatpush3.bf16.msra.mxu1 %v1693_v24 }
 0x211   : > { %1698 = vmatprep.subr.bf16.mxu1 %v1697_v27 }
 0x214   : > { %1700 = vmatpush3.bf16.msra.mxu1 %v1697_v27  ;;  %v1020_v27 = vadd.s32 1, %v1019_v26 }
 0x215   : > { %1702 = vmatprep.subr.bf16.mxu1 %v1701_v30 }
 0x216   : > { %vm1029_vm6 = vcmp.lt.s32.totalorder %v1020_v27, 10 }
 0x217   : > { %vm1034_vm9 = vmand %vm1029_vm6, %vm1032_vm8 }
 0x218   : > { %1704 = vmatpush3.bf16.msra.mxu1 %v1701_v30 }
 0x219   : > { %1706 = vmatprep.subr.bf16.mxu1 %v1705_v33 }
 0x21c   : > { %1708 = vmatpush3.bf16.msra.mxu1 %v1705_v33 }
 0x21f   : > { %1544 = vmatmul.mubr.f32.vlgmr.msra.gmra.mrb[4].mxu1 %v1750_v15 }
 0x2d2   : > { %v735_v35 = vpop.f32.mrb[2].mxu1 }
 0x2d3   : > { %v739_v36 = vadd.f32 %v735_v35, %v488_v34  ;;  %v1475_v37 = vpop.f32.mrb[3].mxu1 }
 0x2d5   : > { %1751 = vtanh.f32 %v739_v36  ;;  %v1022_v36 = vadd.s32 3, %v1019_v26 }
 0x2d7   : > { %vm1031_vm13 = vcmp.lt.s32.totalorder %v1022_v36, 10 }
 0x2d8   : > { %vm1036_vm14 = vmand %vm1031_vm13, %vm1032_vm8 }
 0x2d9   : > { %v1219_v58 = vsel %vm1036_vm14, 1.0, %v1828_v9 }
 0x2df   : > { %v1752_v38 = vpop.eup %1751 }
 0x2e0   : > { %1509 = vmatmul.mubr.f32.vlgmr.msra.gmra.mrb[6].mxu0 %v1752_v38  ;;  %1546 = vmatprep.mubr.f32.mxu1 %v1752_v38 }
 0x2f2   : > { %v1545_v40 = vpop.f32.mrb[4].mxu1 }
 0x2f3   : > { %v2168_v41 = vadd.f32 %v1545_v40, %v1210_v39  ;;  %v913_v42 = vpop.f32.mrb[5].mxu1 }
 0x2f4   : > { %v2170_v43 = vadd.f32 %v1210_v39, %v913_v42  ;;  %v1217_v42 = vsel %vm1034_vm9, 1.0, %v1828_v9 }
 0x2f5   : > { %933 = vst [vmem:[%s1915_s21 + $0x8] sm:$0xff] %v2168_v41  ;;  %v1007_v20 = vmul.f32 %v1212_v19, %v2168_v41 }
 0x2f6   : > { %932 = vst [vmem:[%s1915_s21] sm:$0xff] %v2170_v43  ;;  %936 = vmax.xlane.f32.xlu0 %v2170_v43 }
 0x2fa   : > { %938 = vmax.xlane.f32.xlu0 %v2168_v41 }
 0x310   : > { %983 = vperm.xlu0 %1745, %v978_v44   ;;  %v1216_v44 = vsel %vm1033_vm11, 1.0, %v1828_v9 }
 0x383   : > { %v2180_v46 = vpop.xlane.xlu0 %936 }
 0x384   : > { %v944_v3 = vsub.f32 %v2170_v43, %v2180_v46 }
 0x386   : > { %v948_v4 = vmul.f32 1.442695, %v944_v3 }
 0x387   : > { %v2182_v47 = vpop.xlane.xlu0 %938 }
 0x388   : > { %v945_v48 = vsub.f32 %v2168_v41, %v2182_v47 }
 0x38a   : > { %v950_v49 = vmul.f32 1.442695, %v945_v48 }
 0x38c   : > { %1753 = vpow2.f32 %v950_v49 }
 0x38f   : > { %v984_v13 = vpop.permute.xlu0 %983 }
 0x390   : > { %vm994_vm3 = vcmp.eq.s32.totalorder %v977_v60, %v984_v13 }
 0x391   : > { %v1211_v16 = vsel %vm994_vm3, 1.0, %v1828_v9 }
 0x392   : > { %v1006_v18 = vmul.f32 %v1211_v16, %v2170_v43 }
 0x396   : > { %v1754_v50 = vpop.eup %1753 }
 0x397   : > { %958 = vadd.xlane.f32.xlu0 %v1754_v50 }
 0x3b3   : > { %v811_v52 = vpop.f32.mrb[6].mxu0 }
 0x3b4   : > { %v815_v53 = vadd.f32 %v811_v52, %v493_v51  ;;  %v1510_v54 = vpop.f32.mrb[7].mxu0  ;;  %v1218_v51 = vsel %vm1035_vm12, 1.0, %v1828_v9 }
 0x3b6   : > { %1755 = vtanh.f32 %v815_v53 }
 0x3b7   : > { %1757 = vpow2.f32 %v948_v4 }
 0x3c0   : > { %v1756_v55 = vpop.eup %1755 }
 0x3c1   : > { %819 = vst [vmem:[#allocation4] sm:$0xff] %v1756_v55  ;;  %1547 = vmatmul.mubr.f32.gmra.mrb[6].mxu1 %v1756_v55  ;;  %v1758_v6 = vpop.eup %1757 }
 0x424   : > { %v959_v24 = vpop.xlane.xlu0 %958 }
 0x494   : > { %v1548_v61 = vpop.f32.mrb[6].mxu1 }
 0x495   : > { %v929_v62 = vadd.f32 %v1548_v61, %v1210_v39  ;;  %v923_v56 = vpop.f32.mrb[7].mxu1 }
 0x496   : > { %v924_v0 = vadd.f32 %v1210_v39, %v923_v56 }
 0x497   : > { %935 = vst [vmem:[%s1915_s21 + $0x18] sm:$0xff] %v929_v62  ;;  %942 = vmax.xlane.f32.xlu1 %v929_v62 }
 0x498   : > { %934 = vst [vmem:[%s1915_s21 + $0x10] sm:$0xff] %v924_v0  ;;  %v1008_v1 = vmul.f32 %v1213_v63, %v924_v0  ;;  %v1045_v63 = vld [vmem:[#allocation5] sm:$0xff] }
 0x49a   : > { %1014 = vadd.xlane.f32.xlu0 %v1008_v1 }
 0x49b   : > { %940 = vmax.xlane.f32.xlu1 %v924_v0 }
 0x4ac   : > { %992 = vperm.xlu1 %1746, %v981_v2  }
 0x4d0   : > { %956 = vadd.xlane.f32.xlu1 %v1758_v6 }
 0x524   : > { %v2194_v7 = vpop.xlane.xlu1 %942 }
 0x525   : > { %v947_v8 = vsub.f32 %v929_v62, %v2194_v7 }
 0x527   : > { %v954_v12 = vmul.f32 1.442695, %v947_v8  ;;  %v1015_v50 = vpop.xlane.xlu0 %1014 }
 0x528   : > { %v941_v5 = vpop.xlane.xlu1 %940 }
 0x529   : > { %v946_v10 = vsub.f32 %v924_v0, %v941_v5 }
 0x52b   : > { %v952_v11 = vmul.f32 1.442695, %v946_v10 }
 0x52c   : > { %v993_v17 = vpop.permute.xlu1 %992 }
 0x52d   : > { %1759 = vpow2.f32 %v952_v11  ;;  %vm997_vm5 = vcmp.eq.s32.totalorder %v977_v60, %v993_v17 }
 0x52e   : > { %1761 = vpow2.f32 %v954_v12  ;;  %v1214_v21 = vsel %vm997_vm5, 1.0, %v1828_v9 }
 0x52f   : > { %v1009_v22 = vmul.f32 %v1214_v21, %v929_v62 }
 0x537   : > { %v1760_v14 = vpop.eup %1759 }
 0x538   : > { %960 = vadd.xlane.f32.xlu1 %v1760_v14  ;;  %v1762_v15 = vpop.eup %1761 }
 0x53c   : > { %962 = vadd.xlane.f32.xlu1 %v1762_v15 }
 0x540   : > { %1010 = vadd.xlane.f32.xlu1 %v1006_v18 }
 0x544   : > { %1012 = vadd.xlane.f32.xlu1 %v1007_v20 }
 0x548   : > { %1016 = vadd.xlane.f32.xlu1 %v1009_v22 }
 0x55d   : > { %v957_v23 = vpop.xlane.xlu1 %956 }
 0x55e   : > { %1763 = vlog2.f32 %v957_v23 }
 0x55f   : > { %1765 = vlog2.f32 %v959_v24 }
 0x568   : > { %v1764_v28 = vpop.eup %1763 }
 0x569   : > { %v1766_v30 = vpop.eup %1765  ;;  %v965_v33 = vmul.f32 0.6931472, %v1764_v28 }
 0x56a   : > { %v967_v34 = vmul.f32 0.6931472, %v1766_v30 }
 0x56b   : > { %v972_v37 = vadd.f32 %v965_v33, %v2180_v46 }
 0x56c   : > { %v973_v39 = vadd.f32 %v967_v34, %v2182_v47 }
 0x5c5   : > { %v961_v25 = vpop.xlane.xlu1 %960 }
 0x5c6   : > { %1767 = vlog2.f32 %v961_v25 }
 0x5c9   : > { %v963_v31 = vpop.xlane.xlu1 %962 }
 0x5ca   : > { %1769 = vlog2.f32 %v963_v31 }
 0x5cd   : > { %v1011_v35 = vpop.xlane.xlu1 %1010 }
 0x5ce   : > { %v1046_v41 = vsub.f32 %v972_v37, %v1011_v35 }
 0x5d0   : > { %v1768_v38 = vpop.eup %1767  ;;  %v1050_v47 = vmul.f32 %v1216_v44, %v1046_v41 }
 0x5d1   : > { %v969_v40 = vmul.f32 0.6931472, %v1768_v38  ;;  %v1013_v43 = vpop.xlane.xlu1 %1012 }
 0x5d2   : > { %v1047_v45 = vsub.f32 %v973_v39, %v1013_v43 }
 0x5d3   : > { %v974_v48 = vadd.f32 %v969_v40, %v941_v5 }
 0x5d4   : > { %v1770_v49 = vpop.eup %1769  ;;  %v1051_v46 = vmul.f32 %v1217_v42, %v1047_v45 }
 0x5d5   : > { %v1048_v52 = vsub.f32 %v974_v48, %v1015_v50  ;;  %v971_v53 = vmul.f32 0.6931472, %v1770_v49  ;;  %v1017_v59 = vpop.xlane.xlu1 %1016 }
 0x5d6   : > { %v1054_v54 = vadd.f32 %v1051_v46, %v1050_v47 }
 0x5d7   : > { %v975_v55 = vadd.f32 %v971_v53, %v2194_v7  ;;  %v1052_v57 = vmul.f32 %v1218_v51, %v1048_v52 }
 0x5d9   : > { %v1049_v60 = vsub.f32 %v975_v55, %v1017_v59  ;;  %v1055_v62 = vadd.f32 %v1054_v54, %v1052_v57 }
 0x5db   : > { %v1053_v61 = vmul.f32 %v1219_v58, %v1049_v60  ;;  %1063 = sbr.rel (%p1220_p6) target bundleno = 1529 (0x5f9), region = 56 }
 0x5dd   : > { %v1056_v56 = vadd.f32 %v1055_v62, %v1053_v61 }
 0x5df   : > { %v1057_v0 = vadd.f32 %v1056_v56, %v1045_v63 }
 0x5e1   : > { %1059 = vst.msk [vmem:[#allocation5] sm:$0xff] %vm1058_vm15, %v1057_v0 }
 0x5e8   : > { %v1064_v1 = vld [vmem:[#allocation5] sm:$0xff] }
 0x5e9   : > { %v1065_v2 = vsel %vm1058_vm15, %v1064_v1, 0.0 }
 0x5ea   : > { %v1066_v3 = vrot.slane %v1065_v2, 4 }
 0x5ec   : > { %v1067_v4 = vadd.f32 %v1066_v3, %v1065_v2 }
 0x5ee   : > { %v1068_v6 = vrot.slane %v1067_v4, 2 }
 0x5f0   : > { %v1069_v7 = vadd.f32 %v1068_v6, %v1067_v4 }
 0x5f2   : > { %v1070_v5 = vrot.slane %v1069_v7, 1 }
 0x5f4   : > { %v1071_v9 = vadd.f32 %v1070_v5, %v1069_v7 }
 0x5f6   : > { %v1073_v8 = vmul.f32 0.05, %v1071_v9 }
 0x5f8   : > { %1075 = vst.msk [vmem:[#allocation6] sm:$0x1] %vm1074_vm0, %v1073_v8 }
 0x5f9 PF: > { %p2217_p7 = scmp.eq.s32.totalorder %s1197_s30, 2  ;;  %s1830_s27 = smov [#allocation6]  }
 0x5fa   : > { %s1097_s18 = sshll.u32 %s1830_s27, 4  ;;  %s1098_s18 = int_to_ptr.vmem [resolvable:$true] %s1097_s18 }
 0x5fb   : > { %s1771_s21 = scalar_lea.vmem %s1098_s18, 16  ;;  %s1777_s12 = scalar_lea.vmem %s1098_s18, 32 }
 0x5fc   : > { %p1772_p8 = scmp.ne.s32.totalorder %s1098_s18, %s1771_s21  ;;  %p1778_p11 = scmp.lt.s32.totalorder %s1098_s18, %s1098_s18 }
 0x5fd   : > { %p1779_p12 = scmp.lt.s32.totalorder %s1777_s12, %s1771_s21 }
 0x5fe   : > { %p1773_p9 = pnand %p1772_p8, %p2217_p7 }
 0x5ff   : > { %p1780_p13 = por %p1779_p12, %p1778_p11 }
 0x600   : > { %p1774_p10 = pneg %p1773_p9 }
 0x602   : > { %p1781_p0 = pnand %p1780_p13, %p1774_p10 }
 0x604   : > { %1784 = shalt.err (!%p1781_p0)
}
 0x605   : > { %s1785_s14 = scalar_lea.hbm %s2260_s8, 16 }
 0x606   : > { %p1786_p1 = scmp.ne.s32.totalorder %s2260_s8, %s1785_s14  ;;  %p1791_p4 = scmp.lt.u32.totalorder %s1785_s14, %s2260_s8 }
 0x608   : > { %p1787_p2 = pnand %p1786_p1, %p2217_p7 }
 0x60a   : > { %p1788_p3 = pneg %p1787_p2 }
 0x60c   : > { %p1793_p5 = pnand %p1791_p4, %p1788_p3 }
 0x60e   : > { %1796 = shalt.err (!%p1793_p5)
}
 0x60f   : > { %1710 = dma.vmem_to_hbm [thread:$0]  (%p2217_p7), %s1098_s18, 16, %s2260_s8, [#allocation7]  }
 0x610   : > { %1810 = dma.done.wait (%p2217_p7), [#allocation7], 16  }
 0x611   : > { %1812 = vsyncadd (%p2217_p7), [#allocation7], 4294967280 }
 0x612 PF: > { %s20_s29 = sadd.s32 1, %s1823_s29   ;;  %s2262_s27 = smov %s1819_s28 }
 0x613   : > { %p17_p6 = scmp.ge.s32.totalorder %s20_s29, 5   ;;  %s2263_s28 = smov %s2265_s9 }
 0x615   :  { %19 = sbr.rel (!%p17_p6) target bundleno = 2 (0x2), region = 105 }
 0x61c   :  { %1121 = vsyncpa [#allocation7], 1 }
 0x61d   :  { %1123 = vsyncpa [#allocation7 + $0x1], 1 }

</bundles_post_ra>
